<compile_context>
chip_gen: v7x
topology: tpu7x:2x2x1
jax: 0.10.0
libtpu: 0.0.40
codegen_flags: <defaults>
</compile_context>

<pallas_src>
import math

import jax
import jax.numpy as jnp
from jax.experimental import pallas as pl
from jax.experimental.pallas import tpu as pltpu


def _round_up(a, b):
    return -(-a // b) * b


def _vpe_kernel(col_ref, x_ref, pe_hi_ref, pe_lo_ref, o_ref):
    """One row-tile of the lane-packed, masked positional-encoding add.

    col_ref   : (tr_p, k)     int32  packed-pe column per lane segment; -1 = no add
    x_ref     : (tr_p, L)     x dtype, L = k*d_model (k rows packed into the lanes)
    pe_hi_ref : (n_cols, L)   bf16   block-diagonal pe table, bf16-rounded part
    pe_lo_ref : (n_cols, L)   bf16   f32 residual part (used only for f32 output)
    o_ref     : (tr_p, L)
    """
    tr_p, k = col_ref.shape
    n_cols = pe_hi_ref.shape[0]

    # One-hot over packed-pe columns.  col == -1 (incl. sanitized out-of-range
    # indices and wrapper padding rows) matches nothing -> adds exactly zero.
    # Built as bool, cast to bf16 once (0/1 are exact in bf16).
    # NOTE: on a partial last tile the padded col rows hold unspecified values;
    # they only affect output rows past the array end, which Pallas discards.
    c_iota = jax.lax.broadcasted_iota(jnp.int32, (tr_p, n_cols), 1)
    oh = col_ref[:, 0:1] == c_iota
    for j in range(1, k):                      # unrolled at trace time, k <= 16
        oh = jnp.logical_or(oh, col_ref[:, j:j + 1] == c_iota)
    oh = oh.astype(jnp.bfloat16)

    # Exact gather on the MXU: each one-hot row has at most one match per pe
    # lane block, so every output element is a single product (no accumulation
    # error).  bf16 passes replace the old ~6-pass f32 HIGHEST matmul.
    add = jnp.dot(oh, pe_hi_ref[...], preferred_element_type=jnp.float32)
    if o_ref.dtype == jnp.float32:
        # hi + residual reconstructs f32 pe to ~2^-18 absolute (|pe| <= 1).
        add = add + jnp.dot(oh, pe_lo_ref[...], preferred_element_type=jnp.float32)
        o_ref[...] = x_ref[...] + add          # pure f32 add, no casts
    else:
        # Low-precision output: the hi pass already exceeds output precision;
        # add in the output dtype (bf16 VPU on v6e/v7x, widened by the
        # compiler on v5e).
        o_ref[...] = x_ref[...] + add.astype(o_ref.dtype)


def var_positional_encoding(x, index, pe, *, vmem_budget_bytes=20 * 2**20,
                            donate_x=False):
    """x: [B, num_var, d_model], index: [B, num_var] int (-1 = skip), pe: [seq_len, d_model]."""
    batch, num_var, d_model = x.shape
    seq_len, pe_d = pe.shape
    assert pe_d == d_model, "pe last dim must equal d_model"

    # Lane packing: fold k = 128 // d_model consecutive rows into one 128-lane
    # row so every VPU op / store runs lane-dense (d_model=32 would otherwise
    # use 25% of each lane and emit masked partial stores).
    if d_model < 128 and 128 % d_model == 0:
        k = 128 // d_model
    else:
        k = 1
    lanes = k * d_model
    n_cols = k * seq_len

    total_rows = batch * num_var
    packed_rows = pl.cdiv(total_rows, k)
    rows_padded = packed_rows * k

    x_rows = x.reshape(total_rows, d_model)
    idx = index.astype(jnp.int32).reshape(total_rows)
    if rows_padded != total_rows:
        x_rows = jnp.pad(x_rows, ((0, rows_padded - total_rows), (0, 0)))
        idx = jnp.pad(idx, (0, rows_padded - total_rows), constant_values=-1)
    x_packed = x_rows.reshape(packed_rows, lanes)       # contiguous, free reshape

    # Packed-pe column per row: lane segment j of packed row R gathers from the
    # j-th diagonal block of pe_packed.  Out-of-range indices are sanitized to
    # -1 (add nothing) so they can never alias a neighbouring lane segment.
    j_of_row = jnp.arange(rows_padded, dtype=jnp.int32) % k
    col = jnp.where((idx >= 0) & (idx < seq_len), idx + j_of_row * seq_len, -1)
    col2 = col.reshape(packed_rows, k)                  # row-major: col2[R, j]

    # Block-diagonal pe table, split into bf16 hi + bf16 residual (hi + lo
    # reconstructs f32 pe to ~4e-6 absolute for |pe| <= 1).
    pe32 = pe.astype(jnp.float32)
    if k == 1:
        pe_full = pe32
    else:
        eye = jnp.eye(k, dtype=jnp.float32)
        pe_full = jnp.einsum("ij,sd->isjd", eye, pe32).reshape(n_cols, lanes)
    pe_hi = pe_full.astype(jnp.bfloat16)
    pe_lo = (pe_full - pe_hi.astype(jnp.float32)).astype(jnp.bfloat16)

    # ---- Explicit VMEM budget -> packed-row tile size.
    # Counts: double-buffered x/out tiles, double-buffered col tile (its last
    # dim lane-pads to 128 in VMEM - accounted for here), resident
    # double-buffered pe hi/lo, and one-hot / f32 temporaries.
    itemsize = jnp.dtype(x.dtype).itemsize
    per_row = (4 * lanes * itemsize                 # x + out, 2 buffers each
               + 2 * 128 * 4                        # col tile, lane-padded to 128
               + 8 * _round_up(n_cols, 128)         # one-hot / iota / mask temps
               + 8 * lanes)                         # f32 add + store temps
    fixed = 8 * n_cols * lanes + (1 << 20)          # pe hi+lo, 2 buffers, bf16 (+slack)
    cap_rows = max(128, ((vmem_budget_bytes - fixed) // per_row) // 128 * 128)

    # Tile choice: single block for small inputs (no per-step overhead on
    # single-TC v5e/v6e); otherwise >= 2 "parallel" steps of 128-row multiples
    # so the row axis shards across both TensorCores on v7x.
    if packed_rows <= min(cap_rows, 255):
        tr_p = packed_rows
    else:
        tr_p = min(cap_rows, max(128, _round_up(pl.cdiv(packed_rows, 2), 128)))
    grid = (pl.cdiv(packed_rows, tr_p),)

    est_vmem = fixed + per_row * tr_p
    vmem_limit = int(min(48 << 20, max(16 << 20, est_vmem + (8 << 20))))

    kwargs = {}
    if donate_x:
        kwargs["input_output_aliases"] = {1: 0}     # x_packed is input index 1

    out_packed = pl.pallas_call(
        _vpe_kernel,
        out_shape=jax.ShapeDtypeStruct((packed_rows, lanes), x.dtype),
        grid=grid,
        in_specs=[
            pl.BlockSpec((tr_p, k), lambda r: (r, 0)),           # col
            pl.BlockSpec((tr_p, lanes), lambda r: (r, 0)),       # x (lane-packed)
            pl.BlockSpec((n_cols, lanes), lambda r: (0, 0)),     # pe_hi (resident)
            pl.BlockSpec((n_cols, lanes), lambda r: (0, 0)),     # pe_lo (resident)
        ],
        out_specs=pl.BlockSpec((tr_p, lanes), lambda r: (r, 0)),
        compiler_params=pltpu.CompilerParams(
            dimension_semantics=("parallel",),      # shard rows across TCs on v7x
            vmem_limit_bytes=vmem_limit,
        ),
        **kwargs,
    )(col2, x_packed, pe_hi, pe_lo)

    out_rows = out_packed.reshape(rows_padded, d_model)
    if rows_padded != total_rows:
        out_rows = out_rows[:total_rows]
    return out_rows.reshape(batch, num_var, d_model)


def make_pe(d_model, seq_len):
    """Deterministic sinusoidal table, identical to the module's __init__."""
    assert d_model % 2 == 0, "module's sin/cos interleave assumes even d_model"
    position = jnp.arange(seq_len, dtype=jnp.float32)[:, None]
    div_term = jnp.exp(
        jnp.arange(0, d_model, 2, dtype=jnp.float32) * (-math.log(10000.0) / d_model)
    )
    pe = jnp.zeros((seq_len, d_model), jnp.float32)
    pe = pe.at[:, 0::2].set(jnp.sin(position * div_term))
    pe = pe.at[:, 1::2].set(jnp.cos(position * div_term))
    return pe


def _reference(x, index, pe):
    """Pure-JAX reference of the PyTorch forward (eval-mode dropout)."""
    idx = index.astype(jnp.int32)
    gathered = pe[jnp.maximum(idx, 0)]
    mask = (idx != -1)[..., None]
    return x + jnp.where(mask, gathered, 0.0)


if __name__ == "__main__":
    # Small shapes consistent with the module: d_model=32, num_var=8, seq_len=16
    batch, num_var, d_model, seq_len = 2, 8, 32, 16

    key = jax.random.PRNGKey(0)
    kx, ki = jax.random.split(key)
    x = jax.random.normal(kx, (batch, num_var, d_model), dtype=jnp.float32)
    # index in [-1, seq_len): -1 means "no variation" (skip positional encoding)
    index = jax.random.randint(ki, (batch, num_var), -1, seq_len, dtype=jnp.int32)

    pe = make_pe(d_model, seq_len)

    out = var_positional_encoding(x, index, pe)
    out = jax.block_until_ready(out)

    ref = _reference(x, index, pe)
    # bf16 hi/lo gather reconstructs f32 pe to ~4e-6 abs; well within 1e-5.
    assert jnp.allclose(out, ref, atol=1e-5, rtol=1e-5), "mismatch vs reference"

    print("KERNEL_OK")
</pallas_src>

<mosaic_0001>
module attributes {stable_mosaic.version = 11 : i64} {
  func.func @_vpe_kernel(%arg0: i32, %arg1: memref<4x4xi32, #tpu.memory_space<vmem>>, %arg2: memref<4x128xf32, #tpu.memory_space<vmem>>, %arg3: memref<64x128xbf16, #tpu.memory_space<vmem>>, %arg4: memref<64x128xbf16, #tpu.memory_space<vmem>>, %arg5: memref<4x128xf32, #tpu.memory_space<vmem>>) attributes {dimension_semantics = [#tpu.dimension_semantics<parallel>], iteration_bounds = array<i64: 1>, scalar_prefetch = 0 : i64, scratch_operands = 0 : i64, tpu.core_type = #tpu.core_type<tc>, window_params = [{transform_indices = @transform_0, window_bounds = array<i64: 4, 4>}, {transform_indices = @transform_1, window_bounds = array<i64: 4, 128>}, {pipeline_mode = #tpu.pipeline_mode<synchronous>, transform_indices = @transform_2, window_bounds = array<i64: 64, 128>}, {pipeline_mode = #tpu.pipeline_mode<synchronous>, transform_indices = @transform_3, window_bounds = array<i64: 64, 128>}, {transform_indices = @transform_4, window_bounds = array<i64: 4, 128>}]} {
    %0 = tpu.iota {dimensions = array<i32: 1>} : vector<4x64xi32>
    %c0 = arith.constant 0 : index
    %c0_0 = arith.constant 0 : index
    %1 = vector.load %arg1[%c0, %c0_0] : memref<4x4xi32, #tpu.memory_space<vmem>>, vector<4x1xi32>
    %2 = vector.broadcast %1 : vector<4x1xi32> to vector<4x64xi32>
    %3 = arith.cmpi eq, %2, %0 : vector<4x64xi32>
    %c0_1 = arith.constant 0 : index
    %c1 = arith.constant 1 : index
    %4 = vector.load %arg1[%c0_1, %c1] : memref<4x4xi32, #tpu.memory_space<vmem>>, vector<4x1xi32>
    %5 = vector.broadcast %4 : vector<4x1xi32> to vector<4x64xi32>
    %6 = arith.cmpi eq, %5, %0 : vector<4x64xi32>
    %7 = arith.ori %3, %6 : vector<4x64xi1>
    %c0_2 = arith.constant 0 : index
    %c2 = arith.constant 2 : index
    %8 = vector.load %arg1[%c0_2, %c2] : memref<4x4xi32, #tpu.memory_space<vmem>>, vector<4x1xi32>
    %9 = vector.broadcast %8 : vector<4x1xi32> to vector<4x64xi32>
    %10 = arith.cmpi eq, %9, %0 : vector<4x64xi32>
    %11 = arith.ori %7, %10 : vector<4x64xi1>
    %c0_3 = arith.constant 0 : index
    %c3 = arith.constant 3 : index
    %12 = vector.load %arg1[%c0_3, %c3] : memref<4x4xi32, #tpu.memory_space<vmem>>, vector<4x1xi32>
    %13 = vector.broadcast %12 : vector<4x1xi32> to vector<4x64xi32>
    %14 = arith.cmpi eq, %13, %0 : vector<4x64xi32>
    %15 = arith.ori %11, %14 : vector<4x64xi1>
    %16 = arith.extui %15 : vector<4x64xi1> to vector<4x64xi32>
    %17 = arith.sitofp %16 : vector<4x64xi32> to vector<4x64xf32>
    %18 = arith.truncf %17 : vector<4x64xf32> to vector<4x64xbf16>
    %c0_4 = arith.constant 0 : index
    %c0_5 = arith.constant 0 : index
    %19 = vector.load %arg3[%c0_4, %c0_5] : memref<64x128xbf16, #tpu.memory_space<vmem>>, vector<64x128xbf16>
    %cst = arith.constant dense<0.000000e+00> : vector<4x128xf32>
    %20 = tpu.matmul %18, %19, %cst {dimension_numbers = #tpu.dot_dimension_numbers<[1], [0], [0], [1], [0, 0, 1, 1], [], []>} : vector<4x64xbf16>, vector<64x128xbf16>, vector<4x128xf32> -> vector<4x128xf32>
    %c0_6 = arith.constant 0 : index
    %c0_7 = arith.constant 0 : index
    %21 = vector.load %arg4[%c0_6, %c0_7] : memref<64x128xbf16, #tpu.memory_space<vmem>>, vector<64x128xbf16>
    %cst_8 = arith.constant dense<0.000000e+00> : vector<4x128xf32>
    %22 = tpu.matmul %18, %21, %cst_8 {dimension_numbers = #tpu.dot_dimension_numbers<[1], [0], [0], [1], [0, 0, 1, 1], [], []>} : vector<4x64xbf16>, vector<64x128xbf16>, vector<4x128xf32> -> vector<4x128xf32>
    %23 = arith.addf %20, %22 : vector<4x128xf32>
    %c0_9 = arith.constant 0 : index
    %c0_10 = arith.constant 0 : index
    %24 = vector.load %arg2[%c0_9, %c0_10] : memref<4x128xf32, #tpu.memory_space<vmem>>, vector<4x128xf32>
    %25 = arith.addf %24, %23 : vector<4x128xf32>
    %c0_11 = arith.constant 0 : index
    %c0_12 = arith.constant 0 : index
    %26 = vector.load %arg5[%c0_11, %c0_12] : memref<4x128xf32, #tpu.memory_space<vmem>>, vector<4x128xf32>
    tpu.vector_store %arg5[%c0_11, %c0_12], %25 {strides = array<i32>} : memref<4x128xf32, #tpu.memory_space<vmem>>, vector<4x128xf32>,
    return
  }
  func.func @transform_0(%arg0: i32) -> (i32, i32) {
    %c0_i32 = arith.constant 0 : i32
    %c0_i32_0 = arith.constant 0 : i32
    return %arg0, %c0_i32 : i32, i32
  }
  func.func @transform_1(%arg0: i32) -> (i32, i32) {
    %c0_i32 = arith.constant 0 : i32
    %c0_i32_0 = arith.constant 0 : i32
    return %arg0, %c0_i32 : i32, i32
  }
  func.func @transform_2(%arg0: i32) -> (i32, i32) {
    %c0_i32 = arith.constant 0 : i32
    %c0_i32_0 = arith.constant 0 : i32
    %c0_i32_1 = arith.constant 0 : i32
    return %c0_i32, %c0_i32_0 : i32, i32
  }
  func.func @transform_3(%arg0: i32) -> (i32, i32) {
    %c0_i32 = arith.constant 0 : i32
    %c0_i32_0 = arith.constant 0 : i32
    %c0_i32_1 = arith.constant 0 : i32
    return %c0_i32, %c0_i32_0 : i32, i32
  }
  func.func @transform_4(%arg0: i32) -> (i32, i32) {
    %c0_i32 = arith.constant 0 : i32
    %c0_i32_0 = arith.constant 0 : i32
    return %arg0, %c0_i32 : i32, i32
  }
}

</mosaic_0001>

<bundles_post_ra>
// kernel: tpu_custom_call.1
= control target key start
LH: loop header
LB: loop body
LE: loop exit
PB: predicated region body
PF: predicated region fallthrough
CT: control target
= control target key end

     0   :  { %9 = vsyncpa [#allocation3], 0  ;;  %s550_s0 = inlined_call_operand.hbm [shape: s32[4,4], index: 0, kind: input, shape index: {}]   ;;  %s551_s1 = inlined_call_operand.hbm [shape: f32[4,128], index: 1, kind: input, shape index: {}]   ;;  %s552_s2 = inlined_call_operand.hbm [shape: bf16[64,128], index: 2, kind: input, shape index: {}]   ;;  %s553_s3 = inlined_call_operand.hbm [shape: bf16[64,128], index: 3, kind: input, shape index: {}]   ;;  %s554_s4 = inlined_call_operand.hbm [shape: f32[4,128], index: 4, kind: output, shape index: {}]  }
   0x1   :  { %10 = vsyncpa [#allocation6], 0 }
   0x2   :  { %11 = vsyncpa [#allocation9], 0 }
   0x3   :  { %12 = vsyncpa [#allocation4], 0  ;;  %s452_s15 = smov [#allocation5]   ;;  %s453_s17 = smov [#allocation2]  }
   0x4   :  { %s29_s16 = sshll.u32 %s452_s15, 4  ;;  %s19_s18 = sshll.u32 %s453_s17, 4  ;;  %s30_s16 = int_to_ptr.vmem [resolvable:$true] %s29_s16  ;;  %s20_s18 = int_to_ptr.vmem [resolvable:$true] %s19_s18 }
   0x5   :  { %s334_s21 = scalar_lea.hbm %s551_s1, 64 }
   0x6   :  { %p335_p0 = scmp.ne.s32.totalorder %s551_s1, %s334_s21  ;;  %p338_p1 = scmp.lt.u32.totalorder %s334_s21, %s551_s1 }
   0x8   :  { %p340_p2 = pnand %p338_p1, %p335_p0 }
   0xa   :  { %343 = shalt.err (!%p340_p2)
}
   0xb   :  { %s344_s26 = scalar_lea.vmem %s30_s16, 64  ;;  %p349_p4 = scmp.lt.s32.totalorder %s30_s16, %s30_s16 }
   0xc   :  { %p345_p3 = scmp.ne.s32.totalorder %s30_s16, %s344_s26  ;;  %p350_p5 = scmp.lt.s32.totalorder %s344_s26, %s344_s26 }
   0xe   :  { %p351_p6 = por %p350_p5, %p349_p4 }
  0x10   :  { %p352_p7 = pnand %p351_p6, %p345_p3 }
  0x12   :  { %355 = shalt.err (!%p352_p7)
}
  0x13   :  { %32 = dma.hbm_to_vmem [thread:$0]  %s551_s1, 64, %s30_s16, [#allocation6]  }
  0x14   :  { %s356_s5 = scalar_lea.hbm %s550_s0, 64 }
  0x15   :  { %p357_p8 = scmp.ne.s32.totalorder %s550_s0, %s356_s5  ;;  %p360_p9 = scmp.lt.u32.totalorder %s356_s5, %s550_s0 }
  0x17   :  { %p362_p10 = pnand %p360_p9, %p357_p8 }
  0x19   :  { %365 = shalt.err (!%p362_p10)
}
  0x1a   :  { %s366_s10 = scalar_lea.vmem %s20_s18, 64  ;;  %p371_p12 = scmp.lt.s32.totalorder %s20_s18, %s20_s18 }
  0x1b   :  { %p367_p11 = scmp.ne.s32.totalorder %s20_s18, %s366_s10  ;;  %p372_p13 = scmp.lt.s32.totalorder %s366_s10, %s366_s10 }
  0x1d   :  { %p373_p0 = por %p372_p13, %p371_p12 }
  0x1f   :  { %p374_p1 = pnand %p373_p0, %p367_p11 }
  0x21   :  { %377 = shalt.err (!%p374_p1)
}
  0x22   :  { %22 = dma.hbm_to_vmem [thread:$0]  %s550_s0, 64, %s20_s18, [#allocation3]  }
  0x23   :  { %s454_s12 = smov [#allocation7]   ;;  %s378_s16 = scalar_lea.hbm %s552_s2, 512 }
  0x24   :  { %s38_s13 = sshll.u32 %s454_s12, 4  ;;  %p379_p2 = scmp.ne.s32.totalorder %s552_s2, %s378_s16  ;;  %s39_s13 = int_to_ptr.vmem [resolvable:$true] %s38_s13 }
  0x25   :  { %p382_p3 = scmp.lt.u32.totalorder %s378_s16, %s552_s2 }
  0x27   :  { %p384_p4 = pnand %p382_p3, %p379_p2 }
  0x29   :  { %387 = shalt.err (!%p384_p4)
}
  0x2a   :  { %s388_s22 = scalar_lea.vmem %s39_s13, 512  ;;  %p393_p6 = scmp.lt.s32.totalorder %s39_s13, %s39_s13 }
  0x2b   :  { %p389_p5 = scmp.ne.s32.totalorder %s39_s13, %s388_s22  ;;  %p394_p7 = scmp.lt.s32.totalorder %s388_s22, %s388_s22 }
  0x2d   :  { %p395_p8 = por %p394_p7, %p393_p6 }
  0x2f   :  { %p396_p9 = pnand %p395_p8, %p389_p5 }
  0x31   :  { %399 = shalt.err (!%p396_p9)
}
  0x32   :  { %s455_s0 = smov 64   ;;  %s456_s18 = smov 4  }
  0x33   :  { %44 = dma.hbm_to_vmem [thread:$0]  %s552_s2, 512, %s39_s13, [#allocation6], %s455_s0, %s455_s0, %s456_s18  }
  0x34   :  { %s457_s25 = smov [#allocation8]   ;;  %s400_s29 = scalar_lea.hbm %s553_s3, 512 }
  0x35   :  { %s50_s26 = sshll.u32 %s457_s25, 4  ;;  %p401_p10 = scmp.ne.s32.totalorder %s553_s3, %s400_s29  ;;  %s51_s26 = int_to_ptr.vmem [resolvable:$true] %s50_s26 }
  0x36   :  { %p404_p11 = scmp.lt.u32.totalorder %s400_s29, %s553_s3 }
  0x38   :  { %p406_p12 = pnand %p404_p11, %p401_p10 }
  0x3a   :  { %409 = shalt.err (!%p406_p12)
}
  0x3b   :  { %s410_s8 = scalar_lea.vmem %s51_s26, 512  ;;  %p415_p0 = scmp.lt.s32.totalorder %s51_s26, %s51_s26 }
  0x3c   :  { %p411_p13 = scmp.ne.s32.totalorder %s51_s26, %s410_s8  ;;  %p416_p1 = scmp.lt.s32.totalorder %s410_s8, %s410_s8 }
  0x3e   :  { %p417_p2 = por %p416_p1, %p415_p0 }
  0x40   :  { %p418_p3 = pnand %p417_p2, %p411_p13 }
  0x42   :  { %421 = shalt.err (!%p418_p3)
}
  0x43   :  { %56 = dma.hbm_to_vmem [thread:$0]  %s553_s3, 512, %s51_s26, [#allocation9], %s455_s0, %s455_s0, %s456_s18  }
  0x44   :  { %444 = dma.done.wait [#allocation3], 64  }
  0x45   :  { %445 = vsyncadd [#allocation3], 4294967232 }
  0x46   :  { %446 = dma.done.wait [#allocation6], 576  }
  0x47   :  { %447 = vsyncadd [#allocation6], 4294966720 }
  0x48   :  { %448 = dma.done.wait [#allocation9], 512  }
  0x49   :  { %449 = vsyncadd [#allocation9], 4294966784  ;;  %v458_v0 = vmov 0   ;;  %v459_v1 = vmov 2   ;;  %v460_v2 = vmov 0.0   ;;  %v326_v4 = vld [vmem:[#allocation8] sm:$0xff]   ;;  %v70_v14 = vlaneseq }
  0x4a   :  { %321 = vset.pattern.permute.xlu0 %v458_v0  ;;  %323 = vset.pattern.permute.xlu1 %v459_v1  ;;  %v72_v3 = vld [vmem:[#allocation2] sm:$0xf]  ;;  %v327_v5 = vld [vmem:[#allocation7] sm:$0xff]   ;;  %v328_v6 = vld [vmem:[#allocation8 + $0x8] sm:$0xff]   ;;  %v461_v8 = vmov 1   ;;  %v462_v9 = vmov 3  }
  0x4b   :  { %284 = vmatprep.subr.bf16.mxu0 %v460_v2  ;;  %296 = vmatprep.subr.bf16.mxu1 %v460_v2  ;;  %v329_v7 = vld [vmem:[#allocation7 + $0x8] sm:$0xff]   ;;  %v330_v10 = vld [vmem:[#allocation8 + $0x10] sm:$0xff]   ;;  %v332_v12 = vld [vmem:[#allocation8 + $0x18] sm:$0xff]   ;;  %vm463_vm0 = vmmov 0   ;;  %v71_v17 = vand.u32 127, %v70_v14  ;;  %vm135_vm8 = vcmask 523264  }
  0x4c   :  { %74 = vperm.xlu0 %321, %v72_v3   ;;  %83 = vperm.xlu1 %323, %v72_v3   ;;  %v331_v11 = vld [vmem:[#allocation7 + $0x10] sm:$0xff]   ;;  %v333_v13 = vld [vmem:[#allocation7 + $0x18] sm:$0xff]   ;;  %s464_s3 = smov [#allocation10]  }
  0x4d   :  { %285 = vmatpush3.bf16.msra.mxu0 %v326_v4  ;;  %297 = vmatpush3.bf16.msra.mxu1 %v327_v5  ;;  %v243_v24 = vld [vmem:[#allocation5] sm:$0xf]  ;;  %s252_s10 = sshll.u32 %s464_s3, 4  ;;  %s253_s10 = int_to_ptr.vmem [resolvable:$true] %s252_s10 }
  0x4e   :  { %286 = vmatprep.subr.bf16.mxu0 %v460_v2  ;;  %298 = vmatprep.subr.bf16.mxu1 %v460_v2  ;;  %s422_s1 = scalar_lea.vmem %s253_s10, 64  ;;  %p427_p5 = scmp.lt.s32.totalorder %s253_s10, %s253_s10 }
  0x4f   :  { %292 = vmatprep.mubr.msk.bf16.mxu0 %vm463_vm0, %v460_v2  ;;  %304 = vmatprep.mubr.msk.bf16.mxu1 %vm463_vm0, %v460_v2  ;;  %p423_p4 = scmp.ne.s32.totalorder %s253_s10, %s422_s1  ;;  %p428_p6 = scmp.lt.s32.totalorder %s422_s1, %s422_s1 }
  0x50   :  { %322 = vset.pattern.permute.xlu0 %v461_v8  ;;  %324 = vset.pattern.permute.xlu1 %v462_v9 }
  0x51   :  { %78 = vperm.xlu0 %322, %v72_v3   ;;  %88 = vperm.xlu1 %324, %v72_v3   ;;  %p429_p7 = por %p428_p6, %p427_p5 }
  0x52   :  { %287 = vmatpush3.bf16.msra.mxu0 %v328_v6  ;;  %299 = vmatpush3.bf16.msra.mxu1 %v329_v7 }
  0x53   :  { %288 = vmatprep.subr.bf16.mxu0 %v460_v2  ;;  %300 = vmatprep.subr.bf16.mxu1 %v460_v2  ;;  %p430_p8 = pnand %p429_p7, %p423_p4 }
  0x55   :  { %325 = vset.pattern.permute.xlu0 %v462_v9 }
  0x56   :  { %289 = vmatpush3.bf16.msra.mxu0 %v330_v10  ;;  %301 = vmatpush3.bf16.msra.mxu1 %v331_v11 }
  0x57   :  { %290 = vmatprep.subr.bf16.mxu0 %v460_v2  ;;  %302 = vmatprep.subr.bf16.mxu1 %v460_v2 }
  0x5a   :  { %291 = vmatpush3.bf16.msra.mxu0 %v332_v12  ;;  %303 = vmatpush3.bf16.msra.mxu1 %v333_v13 }
  0xcb   :  { %v75_v15 = vpop.permute.xlu0 %74  ;;  %v84_v16 = vpop.permute.xlu1 %83 }
  0xcc   :  { %vm76_vm1 = vcmp.eq.s32.totalorder %v75_v15, %v71_v17  ;;  %vm85_vm4 = vcmp.eq.s32.totalorder %v84_v16, %v71_v17 }
  0xd0   :  { %v79_v18 = vpop.permute.xlu0 %78  ;;  %v89_v19 = vpop.permute.xlu1 %88 }
  0xd1   :  { %vm80_vm2 = vcmp.eq.s32.totalorder %v79_v18, %v71_v17  ;;  %vm90_vm3 = vcmp.eq.s32.totalorder %v89_v19, %v71_v17 }
  0xd2   :  { %vm81_vm5 = vmor %vm76_vm1, %vm80_vm2 }
  0xd3   :  { %vm86_vm6 = vmor %vm81_vm5, %vm85_vm4 }
  0xd4   :  { %vm91_vm7 = vmor %vm86_vm6, %vm90_vm3 }
  0xd5   :  { %v263_v20 = vsel %vm91_vm7, 1.0, %v460_v2 }
  0xd6   :  { %v94_v21 = vpack.c.bf16 %v263_v20, %v263_v20 }
  0xd8   :  { %293 = vmatmul.mubr.msk.bf16.vlgmr.msra.gmra.mrb[0].mxu0 %vm135_vm8, %v94_v21  ;;  %305 = vmatmul.mubr.msk.bf16.vlgmr.msra.gmra.mrb[0].mxu1 %vm135_vm8, %v94_v21 }
 0x1ab   :  { %v173_v22 = vpop.f32.mrb[0].mxu0  ;;  %v237_v23 = vpop.f32.mrb[0].mxu1 }
 0x1ac   :  { %v238_v25 = vadd.f32 %v237_v23, %v173_v22  ;;  %v294_v26 = vpop.f32.mrb[1].mxu0  ;;  %v306_v27 = vpop.f32.mrb[1].mxu1 }
 0x1ad   :  { %v176_v28 = vpop.f32.mrb[2].mxu0  ;;  %v240_v29 = vpop.f32.mrb[2].mxu1 }
 0x1ae   :  { %v244_v30 = vadd.f32 %v243_v24, %v238_v25  ;;  %v295_v31 = vpop.f32.mrb[3].mxu0  ;;  %v307_v32 = vpop.f32.mrb[3].mxu1 }
 0x1b0   :  { %245 = vst [vmem:[#allocation10] sm:$0xf] %v244_v30 }
 0x1b1   :  { %433 = shalt.err (!%p430_p8)
}
 0x1b2   :  { %s434_s13 = scalar_lea.hbm %s554_s4, 64 }
 0x1b3   :  { %p435_p9 = scmp.ne.s32.totalorder %s554_s4, %s434_s13  ;;  %p438_p10 = scmp.lt.u32.totalorder %s434_s13, %s554_s4 }
 0x1b5   :  { %p440_p11 = pnand %p438_p10, %p435_p9 }
 0x1b7   :  { %443 = shalt.err (!%p440_p11)
}
 0x1b8   :  { %255 = dma.vmem_to_hbm [thread:$0]  %s253_s10, 64, %s554_s4, [#allocation4]  }
 0x1b9   :  { %450 = dma.done.wait [#allocation4], 64  }
 0x1ba   :  { %451 = vsyncadd [#allocation4], 4294967232 }
 0x1bb   :  { %259 = vsyncpa [#allocation3], 1 }
 0x1bc   :  { %260 = vsyncpa [#allocation6], 1 }
 0x1bd   :  { %261 = vsyncpa [#allocation9], 1 }
 0x1be   :  { %262 = vsyncpa [#allocation4], 1 }

</bundles_post_ra>
